<compile_context>
chip_gen: v7x
topology: tpu7x:2x2x1
jax: 0.10.0
libtpu: 0.0.40
codegen_flags: <defaults>
</compile_context>

<pallas_src>
import jax
import jax.numpy as jnp
from jax.experimental import pallas as pl
from jax.experimental.pallas import tpu as pltpu

F_IN = 512          # fixed by nn.Linear(512, output_dim)
OUT_DIM = 128       # output_dim
BATCH = 8
N_HEADS = 2         # e.g. vision head + audio head fused into one call
BN_EPS = 1e-5


def _proj_bn_relu_kernel(x_ref, w_ref, p_ref, o_ref):
    # x_ref: [B, F] bf16   w_ref: [F, dblk] bf16   p_ref: [2, dblk] f32   o_ref: [B, dblk] bf16
    # Linear (bias omitted: cancelled by training-mode BN mean subtraction).
    y = jnp.dot(x_ref[...], w_ref[...], preferred_element_type=jnp.float32)   # [B, dblk] f32

    # BatchNorm1d (training-mode forward): batch statistics, biased variance, eps = 1e-5.
    mean = jnp.mean(y, axis=0, keepdims=True)                                 # [1, dblk]
    centered = y - mean
    var = jnp.mean(centered * centered, axis=0, keepdims=True)
    inv_std = jax.lax.rsqrt(var + BN_EPS)                                     # EUP

    # Fold inv_std into gamma -> single fused mul-add on the [B, dblk] path, ReLU fused in.
    scale = p_ref[0:1, :] * inv_std                                           # gamma * inv_std
    shift = p_ref[1:2, :]                                                     # beta
    o_ref[...] = jnp.maximum(centered * scale + shift, 0.0).astype(o_ref.dtype)


def _pick_d_block(d):
    # Generation-aware tile width: 512 amortizes per-step overhead and fills the 256-wide MXU on
    # v6e/v7x (exactly matches 4 passes of v5e's 128-wide MXU); never drop below 128 lanes.
    for cand in (512, 256, 128):
        if d % cand == 0:
            return cand
    # TODO(synk): OUT_DIM not a multiple of 128 -> masked partial stores; pad D in storage instead.
    return d


def modality_encoder_projection(x_bf16, w_bf16, gamma_beta, out_dtype=jnp.bfloat16):
    """x_bf16:     [H, B, 512] bf16 flattened backbone features (one group per head/modality).
    w_bf16:     [H, 512, D]  bf16 Linear weights (transposed vs PyTorch).
    gamma_beta: [H, 2, D]    f32  (row 0 = gamma, row 1 = beta).
    Returns [H, B, D] in out_dtype (BN math done in f32, cast at the final store)."""
    H, B, F = x_bf16.shape
    _, _, D = w_bf16.shape

    d_block = _pick_d_block(D)
    grid = (H, pl.cdiv(D, d_block))

    out_bytes = jnp.dtype(out_dtype).itemsize
    cost = pl.CostEstimate(
        flops=2 * H * B * F * D,
        transcendentals=H * D,                       # rsqrt per output feature
        bytes_accessed=H * (B * F * 2 + F * D * 2 + 2 * D * 4 + B * D * out_bytes),
    )

    return pl.pallas_call(
        _proj_bn_relu_kernel,
        out_shape=jax.ShapeDtypeStruct((H, B, D), out_dtype),
        grid=grid,
        in_specs=[
            # x: constant index along the D axis -> stays VMEM-resident across D-steps.
            pl.BlockSpec((None, B, F), lambda h, j: (h, 0, 0)),          # [B, F]      bf16
            pl.BlockSpec((None, F, d_block), lambda h, j: (h, 0, j)),    # [F, dblk]   bf16
            pl.BlockSpec((None, 2, d_block), lambda h, j: (h, 0, j)),    # [2, dblk]   f32
        ],
        out_specs=pl.BlockSpec((None, B, d_block), lambda h, j: (h, 0, j)),
        compiler_params=pltpu.CompilerParams(
            # Every (head, D-tile) is independent (BN reduces over batch only) -> both parallel;
            # gives v7x's second TensorCore work even when OUT_DIM == 128.
            dimension_semantics=("parallel", "parallel"),
        ),
        cost_estimate=cost,
    )(x_bf16, w_bf16, gamma_beta)


def _reference(x_f32, w_f32, b_f32, gamma, beta):
    # Full original-module math (incl. the Linear bias, which cancels under training-mode BN).
    y = x_f32 @ w_f32 + b_f32
    mean = y.mean(axis=0, keepdims=True)
    var = ((y - mean) ** 2).mean(axis=0, keepdims=True)
    y_hat = (y - mean) / jnp.sqrt(var + BN_EPS)
    return jnp.maximum(gamma * y_hat + beta, 0.0)


if __name__ == "__main__":
    key = jax.random.PRNGKey(0)
    kx, kw, kb = jax.random.split(key, 3)

    # Deterministic "backbone output" features (post-flatten), one batch per head: [H, B, 512].
    x = jax.random.normal(kx, (N_HEADS, BATCH, F_IN), dtype=jnp.float32)

    # PyTorch Linear default init: U(-1/sqrt(fan_in), 1/sqrt(fan_in)).
    bound = 1.0 / (F_IN ** 0.5)
    w = jax.random.uniform(kw, (N_HEADS, F_IN, OUT_DIM), minval=-bound, maxval=bound,
                           dtype=jnp.float32)
    b = jax.random.uniform(kb, (N_HEADS, 1, OUT_DIM), minval=-bound, maxval=bound,
                           dtype=jnp.float32)
    # BatchNorm1d default init: gamma = 1, beta = 0.
    gamma = jnp.ones((N_HEADS, 1, OUT_DIM), dtype=jnp.float32)
    beta = jnp.zeros((N_HEADS, 1, OUT_DIM), dtype=jnp.float32)

    # Kernel-side storage: bf16 activations/weights (MXU native, half the HBM traffic), packed
    # f32 BN affine params, no Linear bias (cancels under training-mode BN -- guard this if the
    # module is ever run in eval mode with running statistics).
    x_bf16 = x.astype(jnp.bfloat16)
    w_bf16 = w.astype(jnp.bfloat16)
    gamma_beta = jnp.concatenate([gamma, beta], axis=1)            # [H, 2, D]

    out = modality_encoder_projection(x_bf16, w_bf16, gamma_beta)
    out = jax.block_until_ready(out)
    assert out.shape == (N_HEADS, BATCH, OUT_DIM)
    assert out.dtype == jnp.bfloat16

    # Reference uses the same bf16-quantized values (cast back to f32) plus the bias, per head,
    # to show the kernel reproduces the original module's training-mode forward.
    out_f32 = out.astype(jnp.float32)
    for h in range(N_HEADS):
        ref_h = _reference(x_bf16[h].astype(jnp.float32), w_bf16[h].astype(jnp.float32),
                           b[h], gamma[h], beta[h])
        assert jnp.allclose(out_f32[h], ref_h, atol=2e-2, rtol=2e-2), f"head {h} mismatch"

    print("KERNEL_OK")
</pallas_src>

<mosaic_0001>
module attributes {stable_mosaic.version = 11 : i64} {
  func.func @_proj_bn_relu_kernel(%arg0: i32, %arg1: i32, %arg2: memref<1x8x512xbf16, #tpu.memory_space<vmem>>, %arg3: memref<1x512x128xbf16, #tpu.memory_space<vmem>>, %arg4: memref<1x2x128xf32, #tpu.memory_space<vmem>>, %arg5: memref<1x8x128xbf16, #tpu.memory_space<vmem>>) attributes {dimension_semantics = [#tpu.dimension_semantics<parallel>, #tpu.dimension_semantics<parallel>], iteration_bounds = array<i64: 2, 1>, scalar_prefetch = 0 : i64, scratch_operands = 0 : i64, tpu.core_type = #tpu.core_type<tc>, window_params = [{transform_indices = @transform_0, window_bounds = array<i64: 1, 8, 512>}, {transform_indices = @transform_1, window_bounds = array<i64: 1, 512, 128>}, {transform_indices = @transform_2, window_bounds = array<i64: 1, 2, 128>}, {transform_indices = @transform_3, window_bounds = array<i64: 1, 8, 128>}]} {
    %c0 = arith.constant 0 : index
    %c0_0 = arith.constant 0 : index
    %c0_1 = arith.constant 0 : index
    %0 = vector.load %arg2[%c0, %c0_0, %c0_1] : memref<1x8x512xbf16, #tpu.memory_space<vmem>>, vector<1x8x512xbf16>
    %1 = vector.shape_cast %0 : vector<1x8x512xbf16> to vector<8x512xbf16>
    %c0_2 = arith.constant 0 : index
    %c0_3 = arith.constant 0 : index
    %c0_4 = arith.constant 0 : index
    %2 = vector.load %arg3[%c0_2, %c0_3, %c0_4] : memref<1x512x128xbf16, #tpu.memory_space<vmem>>, vector<1x512x128xbf16>
    %3 = vector.shape_cast %2 : vector<1x512x128xbf16> to vector<512x128xbf16>
    %cst = arith.constant dense<0.000000e+00> : vector<8x128xf32>
    %4 = tpu.matmul %1, %3, %cst {dimension_numbers = #tpu.dot_dimension_numbers<[1], [0], [0], [1], [0, 0, 1, 1], [], []>} : vector<8x512xbf16>, vector<512x128xbf16>, vector<8x128xf32> -> vector<8x128xf32>
    %cst_5 = arith.constant dense<0.000000e+00> : vector<128xf32>
    %5 = vector.multi_reduction <add>, %4, %cst_5 [0] : vector<8x128xf32> to vector<128xf32>
    %6 = vector.shape_cast %5 : vector<128xf32> to vector<1x128xf32>
    %cst_6 = arith.constant 8.000000e+00 : f32
    %7 = vector.broadcast %cst_6 : f32 to vector<1x128xf32>
    %8 = arith.divf %6, %7 : vector<1x128xf32>
    %9 = vector.broadcast %8 : vector<1x128xf32> to vector<8x128xf32>
    %10 = arith.subf %4, %9 : vector<8x128xf32>
    %11 = arith.mulf %10, %10 : vector<8x128xf32>
    %cst_7 = arith.constant dense<0.000000e+00> : vector<128xf32>
    %12 = vector.multi_reduction <add>, %11, %cst_7 [0] : vector<8x128xf32> to vector<128xf32>
    %13 = vector.shape_cast %12 : vector<128xf32> to vector<1x128xf32>
    %cst_8 = arith.constant 8.000000e+00 : f32
    %14 = vector.broadcast %cst_8 : f32 to vector<1x128xf32>
    %15 = arith.divf %13, %14 : vector<1x128xf32>
    %cst_9 = arith.constant 9.99999974E-6 : f32
    %16 = vector.broadcast %cst_9 : f32 to vector<1x128xf32>
    %17 = arith.addf %15, %16 : vector<1x128xf32>
    %18 = math.rsqrt %17 : vector<1x128xf32>
    %c0_10 = arith.constant 0 : index
    %c0_11 = arith.constant 0 : index
    %c0_12 = arith.constant 0 : index
    %19 = vector.load %arg4[%c0_10, %c0_11, %c0_12] : memref<1x2x128xf32, #tpu.memory_space<vmem>>, vector<1x1x128xf32>
    %20 = vector.shape_cast %19 : vector<1x1x128xf32> to vector<1x128xf32>
    %21 = arith.mulf %20, %18 : vector<1x128xf32>
    %c0_13 = arith.constant 0 : index
    %c1 = arith.constant 1 : index
    %c0_14 = arith.constant 0 : index
    %22 = vector.load %arg4[%c0_13, %c1, %c0_14] : memref<1x2x128xf32, #tpu.memory_space<vmem>>, vector<1x1x128xf32>
    %23 = vector.shape_cast %22 : vector<1x1x128xf32> to vector<1x128xf32>
    %24 = vector.broadcast %21 : vector<1x128xf32> to vector<8x128xf32>
    %25 = arith.mulf %10, %24 : vector<8x128xf32>
    %26 = vector.broadcast %23 : vector<1x128xf32> to vector<8x128xf32>
    %27 = arith.addf %25, %26 : vector<8x128xf32>
    %cst_15 = arith.constant 0.000000e+00 : f32
    %28 = vector.broadcast %cst_15 : f32 to vector<8x128xf32>
    %29 = arith.maximumf %27, %28 : vector<8x128xf32>
    %30 = arith.truncf %29 : vector<8x128xf32> to vector<8x128xbf16>
    %c0_16 = arith.constant 0 : index
    %c0_17 = arith.constant 0 : index
    %c0_18 = arith.constant 0 : index
    %31 = vector.load %arg5[%c0_16, %c0_17, %c0_18] : memref<1x8x128xbf16, #tpu.memory_space<vmem>>, vector<1x8x128xbf16>
    %32 = vector.shape_cast %31 : vector<1x8x128xbf16> to vector<8x128xbf16>
    %33 = vector.shape_cast %30 : vector<8x128xbf16> to vector<1x8x128xbf16>
    tpu.vector_store %arg5[%c0_16, %c0_17, %c0_18], %33 {strides = array<i32>} : memref<1x8x128xbf16, #tpu.memory_space<vmem>>, vector<1x8x128xbf16>,
    return
  }
  func.func @transform_0(%arg0: i32, %arg1: i32) -> (i32, i32, i32) {
    %c0_i32 = arith.constant 0 : i32
    %c0_i32_0 = arith.constant 0 : i32
    %c0_i32_1 = arith.constant 0 : i32
    return %arg0, %c0_i32, %c0_i32_0 : i32, i32, i32
  }
  func.func @transform_1(%arg0: i32, %arg1: i32) -> (i32, i32, i32) {
    %c0_i32 = arith.constant 0 : i32
    %c0_i32_0 = arith.constant 0 : i32
    return %arg0, %c0_i32, %arg1 : i32, i32, i32
  }
  func.func @transform_2(%arg0: i32, %arg1: i32) -> (i32, i32, i32) {
    %c0_i32 = arith.constant 0 : i32
    %c0_i32_0 = arith.constant 0 : i32
    return %arg0, %c0_i32, %arg1 : i32, i32, i32
  }
  func.func @transform_3(%arg0: i32, %arg1: i32) -> (i32, i32, i32) {
    %c0_i32 = arith.constant 0 : i32
    %c0_i32_0 = arith.constant 0 : i32
    return %arg0, %c0_i32, %arg1 : i32, i32, i32
  }
}

</mosaic_0001>

<bundles_post_ra>
// kernel: tpu_custom_call.1
= control target key start
LH: loop header
LB: loop body
LE: loop exit
PB: predicated region body
PF: predicated region fallthrough
CT: control target
= control target key end

     0   :  { %8 = vsyncpa [#allocation3], 0  ;;  %s1443_s0 = inlined_call_operand.hbm [shape: bf16[2,8,512], index: 0, kind: input, shape index: {}]   ;;  %s1444_s1 = inlined_call_operand.hbm [shape: bf16[2,512,128], index: 1, kind: input, shape index: {}]   ;;  %s1445_s2 = inlined_call_operand.vmem [shape: f32[2,2,128], index: 2, kind: input, shape index: {}]   ;;  %s1446_s3 = inlined_call_operand.hbm [shape: bf16[2,8,128], index: 3, kind: output, shape index: {}]  }
   0x1   :  { %10 = vsyncpa [#allocation3 + $0x1], 0 }
   0x2   :  { %11 = vsyncpa [#allocation6], 0 }
   0x3   :  { %13 = vsyncpa [#allocation6 + $0x1], 0 }
   0x4   :  { %14 = vsyncpa [#allocation4], 0 }
   0x5   :  { %16 = vsyncpa [#allocation4 + $0x1], 0  ;;  %s1176_s12 = smov 0   ;;  %s1178_s13 = smov 0  }
   0x6   :  { %s1180_s14 = smov 0   ;;  %s1182_s15 = smov 0  }
   0x7   :  { %s1184_s16 = smov 0   ;;  %s1186_s17 = smov 0  }
   0x8 LB: > { %s794_s18 = sadd.s32 4294967295, %s1149_s17   ;;  %s795_s19 = sadd.s32 4294967294, %s1149_s17   ;;  %s1149_s17 = sphi %s1186_s17, %s22_s17   ;;  %s1145_s16 = sphi %s1184_s16, %s1465_s16   ;;  %s1141_s15 = sphi %s1182_s15, %s1464_s15   ;;  %s1137_s14 = sphi %s1180_s14, %s1463_s14   ;;  %s1133_s13 = sphi %s1178_s13, %s1462_s13   ;;  %s1129_s12 = sphi %s1176_s12, %s1461_s12  }
   0x9   : > { %s34_s20 = sadd.s32 1, %s1145_s16  ;;  %s41_s21 = sadd.s32 1, %s1137_s14 }
   0xa   : > { %p36_p0 = scmp.ge.s32.totalorder %s34_s20, 2  ;;  %p48_p1 = scmp.ne.s32.totalorder %s1137_s14, %s1133_s13 }
   0xb   : > { %p49_p2 = scmp.eq.s32.totalorder %s1149_s17, 0  ;;  %p54_p3 = scmp.ne.s32.totalorder %s1133_s13, %s1129_s12 }
   0xc   : > { %s1467_s20 = smov (%p36_p0, %s34_s20), 0  ;;  %p55_p5 = scmp.eq.s32.totalorder %s794_s18, 0 }
   0xd   : > { %p1217_p4 = por %p49_p2, %p48_p1  ;;  %s38_s23 = ssub.s32 %s1145_s16, %s1467_s20 }
   0xe   : > { %p136_p6 = scmp.eq.s32.totalorder %s794_s18, 1  ;;  %p39_p7 = scmp.eq.s32.totalorder %s38_s23, 0 }
   0xf   : > { %p1223_p8 = por %p55_p5, %p54_p3  ;;  %p142_p10 = scmp.eq.s32.totalorder %s795_s19, 1 }
  0x10   : > { %p1227_p9 = por %p136_p6, %p48_p1  ;;  %p913_p13 = scmp.lt.s32.totalorder %s1149_s17, 2 }
  0x11   : > { %s1450_s24 = scalar_select %p1223_p8, 1, 0 }
  0x12   : > { %s1451_s25 = scalar_select %p1227_p9, 1, 0 }
  0x13   : > { %s1232_s26 = scalar_select %p39_p7, %s1137_s14, %s41_s21  }
  0x14   : > { %p1234_p11 = por %p142_p10, %p54_p3  ;;  %s1241_s28 = sand.u32 1, %s1137_s14  }
  0x15   : > { %s798_s29 = sshll.u32 %s1241_s28, 4  ;;  %s850_s30 = sshll.u32 %s1145_s16, 8 }
  0x16   : > { %s1452_s27 = scalar_select %p1234_p11, 1, 0 }
  0x17   : > { %s1248_s6 = scalar_lea.hbm %s1443_s0, %s850_s30  ;;  %s166_s7 = scalar_lea.vmem [#allocation2], %s798_s29 }
  0x18   : > { %s174_s8 = sshll.u32 %s166_s7, 4  ;;  %p1254_p0 = pnand %p913_p13, %p1217_p4  ;;  %s1250_s8 = int_to_ptr.vmem [resolvable:$true] %s174_s8 }
  0x19   : > { %s163_s10 = scalar_lea.sflag [#allocation3], %s1241_s28  ;;  %s1003_s11 = scalar_lea.hbm %s1248_s6, 256 }
  0x1a   : > { %p1004_p3 = scmp.ne.s32.totalorder %s1248_s6, %s1003_s11  ;;  %p1005_p5 = pneg %p1254_p0 }
  0x1b   : > { %s1008_s21 = scalar_lea.hbm %s1443_s0, 512  ;;  %p1009_p4 = scmp.lt.u32.totalorder %s1248_s6, %s1443_s0 }
  0x1c   : > { %p1006_p6 = pnand %p1005_p5, %p1004_p3  ;;  %p1010_p10 = scmp.lt.u32.totalorder %s1008_s21, %s1003_s11 }
  0x1d   : > { %p1012_p12 = scmp.lt.u32.totalorder %s1003_s11, %s1248_s6 }
  0x1e   : > { %p1007_p7 = pneg %p1006_p6  ;;  %p1011_p13 = por %p1010_p10, %p1009_p4 }
  0x20   : > { %p1013_p1 = por %p1012_p12, %p1011_p13 }
  0x22   : > { %p1014_p2 = pnand %p1013_p1, %p1007_p7 }
  0x24   : > { %1017 = shalt.err (!%p1014_p2)
}
  0x25   : > { %s1018_s29 = scalar_lea.vmem %s1250_s8, 256  ;;  %s1151_s30 = smov [#allocation2]  }
  0x26   : > { %p1019_p3 = scmp.ne.s32.totalorder %s1250_s8, %s1018_s29  ;;  %s1023_s4 = sshll.u32 %s1151_s30, 4  ;;  %s1024_s4 = int_to_ptr.vmem [resolvable:$false] %s1023_s4 }
  0x27   : > { %s1025_s5 = scalar_lea.vmem %s1024_s4, 512  ;;  %p1026_p9 = scmp.lt.s32.totalorder %s1250_s8, %s1024_s4 }
  0x28   : > { %p1021_p6 = pnand %p1019_p3, %p1005_p5  ;;  %p1027_p4 = scmp.lt.s32.totalorder %s1025_s5, %s1018_s29 }
  0x2a   : > { %p1022_p11 = pneg %p1021_p6  ;;  %p1028_p10 = por %p1027_p4, %p1026_p9 }
  0x2c   : > { %p1029_p12 = pnand %p1028_p10, %p1022_p11 }
  0x2e   : > { %1032 = shalt.err (!%p1029_p12)
}
  0x2f   : > { %905 = dma.hbm_to_vmem [thread:$0]  (!%p1254_p0), %s1248_s6, 256, %s1250_s8, %s163_s10  }
  0x30   : > { %p1454_p1 = scmp.lt.s32.totalorder %s1149_s17, 3  ;;  %p1455_p2 = scmp.ge.s32.totalorder %s1149_s17, 1 }
  0x31   : > { %s801_s11 = sshll.u32 %s1241_s28, 8  ;;  %s851_s18 = sshll.u32 %s1145_s16, 12 }
  0x32   : > { %p1290_p7 = pnand %p1455_p2, %p1454_p1  ;;  %s1299_s22 = scalar_lea.hbm %s1444_s1, %s851_s18 }
  0x33   : > { %s185_s23 = scalar_lea.vmem [#allocation5], %s801_s11  ;;  %s182_s6 = scalar_lea.sflag [#allocation6], %s1241_s28 }
  0x34   : > { %s193_s29 = sshll.u32 %s185_s23, 4  ;;  %s1033_s8 = scalar_lea.hbm %s1299_s22, 4096  ;;  %s1301_s29 = int_to_ptr.vmem [resolvable:$true] %s193_s29 }
  0x35   : > { %p1034_p9 = scmp.ne.s32.totalorder %s1299_s22, %s1033_s8  ;;  %s1038_s4 = scalar_lea.hbm %s1444_s1, 8192 }
  0x36   : > { %p1039_p3 = scmp.lt.u32.totalorder %s1299_s22, %s1444_s1  ;;  %p1040_p6 = scmp.lt.u32.totalorder %s1038_s4, %s1033_s8 }
  0x37   : > { %p1036_p11 = pnand %p1034_p9, %p1005_p5  ;;  %p1042_p10 = scmp.lt.u32.totalorder %s1033_s8, %s1299_s22 }
  0x38   : > { %p1041_p4 = por %p1040_p6, %p1039_p3 }
  0x39   : > { %p1037_p13 = pneg %p1036_p11 }
  0x3a   : > { %p1043_p12 = por %p1042_p10, %p1041_p4 }
  0x3c   : > { %p1044_p1 = pnand %p1043_p12, %p1037_p13 }
  0x3e   : > { %1047 = shalt.err (!%p1044_p1)
}
  0x3f   : > { %s1048_s11 = scalar_lea.vmem %s1301_s29, 4096  ;;  %s1152_s19 = smov [#allocation5]  }
  0x40   : > { %p1049_p2 = scmp.ne.s32.totalorder %s1301_s29, %s1048_s11  ;;  %s1053_s21 = sshll.u32 %s1152_s19, 4  ;;  %s1054_s21 = int_to_ptr.vmem [resolvable:$false] %s1053_s21 }
  0x41   : > { %s1055_s23 = scalar_lea.vmem %s1054_s21, 8192  ;;  %p1056_p8 = scmp.lt.s32.totalorder %s1301_s29, %s1054_s21 }
  0x42   : > { %p1051_p9 = pnand %p1049_p2, %p1005_p5  ;;  %p1057_p3 = scmp.lt.s32.totalorder %s1055_s23, %s1048_s11 }
  0x44   : > { %p1052_p11 = pneg %p1051_p9  ;;  %p1058_p6 = por %p1057_p3, %p1056_p8 }
  0x46   : > { %p1059_p4 = pnand %p1058_p6, %p1052_p11 }
  0x48   : > { %1062 = shalt.err (!%p1059_p4)
}
  0x49   : > { %s1153_s8 = smov 64   ;;  %s1154_s10 = smov 4  }
  0x4a   : > { %908 = dma.hbm_to_vmem [thread:$0]  (!%p1254_p0), %s1299_s22, 4096, %s1301_s29, %s182_s6, %s1153_s8, %s1153_s8, %s1154_s10  }
  0x4b   : > { %215 = sbr.rel (%p1290_p7) target bundleno = 409 (0x199), region = 32  ;;  %s1332_s30 = sand.u32 (!%p1290_p7), 1, %s1133_s13  }
  0x4c   : > { %s805_s4 = sshll.u32 (!%p1290_p7), %s1332_s30, 4  ;;  %s218_s5 = scalar_lea.sflag (!%p1290_p7), [#allocation3], %s1332_s30 }
  0x4d   : > { %s1336_s18 = scalar_lea.vmem (!%p1290_p7), [#allocation2], %s805_s4  ;;  %p1457_p8 = scmp.ne.s32.totalorder (!%p1290_p7), %s1450_s24, 0 }
  0x52   : > { %1116 = dma.done.wait (%p1457_p8), %s218_s5, 256  }
  0x53   : > { %1118 = vsyncadd (%p1457_p8), %s218_s5, 4294967040  ;;  %s806_s28 = sshll.u32 %s1332_s30, 8  ;;  %s227_s9 = scalar_lea.sflag [#allocation6], %s1332_s30 }
  0x54   : > { %s1344_s7 = scalar_lea.vmem [#allocation5], %s806_s28 }
  0x55   : > { %1120 = dma.done.wait (%p1457_p8), %s227_s9, 4096  }
  0x56   : > { %1122 = vsyncadd (%p1457_p8), %s227_s9, 4294963200  ;;  %v965_v0 = vld [vmem:[%s1344_s7 + $0x40] sm:$0xff]   ;;  %v969_v4 = vld [vmem:[%s1344_s7 + $0x48] sm:$0xff]   ;;  %p265_p0 = scmp.lt.s32.totalorder %s1141_s15, 1  ;;  %s807_s19 = sshll.u32 %s1332_s30, 2 }
  0x57   : > { %v966_v1 = vld [vmem:[%s1344_s7 + $0xc0] sm:$0xff]   ;;  %852 = vmatprep.subr.bf16.mxu0 %v965_v0  ;;  %v970_v5 = vld [vmem:[%s1344_s7 + $0xc8] sm:$0xff]   ;;  %v973_v8 = vld [vmem:[%s1344_s7 + $0x50] sm:$0xff]   ;;  %s847_s21 = sshll.u32 %s1141_s15, 6  ;;  %s264_s23 = scalar_lea.vmem [#allocation7], %s807_s19 }
  0x58   : > { %v967_v2 = vld [vmem:[%s1344_s7] sm:$0xff]   ;;  %874 = vmatprep.subr.bf16.mxu1 %v966_v1  ;;  %v971_v6 = vld [vmem:[%s1344_s7 + $0x8] sm:$0xff]   ;;  %v974_v9 = vld [vmem:[%s1344_s7 + $0xd0] sm:$0xff]   ;;  %s266_s24 = scalar_select %p265_p0, %s1141_s15, 1 }
  0x59   : > { %v968_v3 = vld [vmem:[%s1344_s7 + $0x80] sm:$0xff]   ;;  %853 = vmatpush3.bf16.msra.mxu0 %v967_v2  ;;  %v972_v7 = vld [vmem:[%s1344_s7 + $0x88] sm:$0xff]   ;;  %v975_v10 = vld [vmem:[%s1344_s7 + $0x10] sm:$0xff]   ;;  %v647_v2 = vlaneseq  ;;  %s675_s8 = sshll.u32 %s264_s23, 4  ;;  %s1394_s5 = scalar_lea.hbm %s1446_s3, %s847_s21  ;;  %s1396_s8 = int_to_ptr.vmem [resolvable:$true] %s675_s8 }
  0x5a   : > { %875 = vmatpush3.bf16.msra.mxu1 %v968_v3  ;;  %854 = vmatprep.subr.bf16.mxu0 %v969_v4  ;;  %v976_v11 = vld [vmem:[%s1344_s7 + $0x90] sm:$0xff]   ;;  %v977_v12 = vld [vmem:[%s1344_s7 + $0x58] sm:$0xff]   ;;  %v981_v16 = vld [vmem:[%s1344_s7 + $0x60] sm:$0xff]   ;;  %s808_s22 = sshll.u32 %s266_s24, 1  ;;  %s1063_s28 = scalar_lea.vmem %s1396_s8, 64 }
  0x5b   : > { %876 = vmatprep.subr.bf16.mxu1 %v970_v5  ;;  %v978_v13 = vld [vmem:[%s1344_s7 + $0xd8] sm:$0xff]   ;;  %v982_v17 = vld [vmem:[%s1344_s7 + $0xe0] sm:$0xff]   ;;  %v985_v20 = vld [vmem:[%s1344_s7 + $0x68] sm:$0xff]   ;;  %s271_s11 = scalar_lea.vmem %s1445_s2, %s808_s22  ;;  %v648_v3 = vshrl.u32 %v647_v2, 7  ;;  %p1064_p5 = scmp.ne.s32.totalorder %s1396_s8, %s1063_s28 }
  0x5c   : > { %v979_v14 = vld [vmem:[%s1344_s7 + $0x18] sm:$0xff]   ;;  %v983_v18 = vld [vmem:[%s1344_s7 + $0x20] sm:$0xff]   ;;  %v986_v21 = vld [vmem:[%s1344_s7 + $0xe8] sm:$0xff]   ;;  %p1458_p7 = scmp.ne.s32.totalorder %s1451_s25, 0  ;;  %s1155_s15 = smov [#allocation7]  }
  0x5d   : > { %855 = vmatpush3.bf16.msra.mxu0 %v971_v6  ;;  %v980_v15 = vld [vmem:[%s1344_s7 + $0x98] sm:$0xff]   ;;  %v984_v19 = vld [vmem:[%s1344_s7 + $0xa0] sm:$0xff]   ;;  %v987_v22 = vld [vmem:[%s1344_s7 + $0x28] sm:$0xff]   ;;  %v649_v5 = vsub.s32 0, %v648_v3  ;;  %s1067_s9 = sshll.u32 %s1155_s15, 4  ;;  %s1068_s9 = int_to_ptr.vmem [resolvable:$false] %s1067_s9 }
  0x5e   : > { %877 = vmatpush3.bf16.msra.mxu1 %v972_v7  ;;  %856 = vmatprep.subr.bf16.mxu0 %v973_v8  ;;  %v988_v23 = vld [vmem:[%s1344_s7 + $0xa8] sm:$0xff]   ;;  %v989_v24 = vld [vmem:[%s1344_s7 + $0x70] sm:$0xff]   ;;  %v993_v28 = vld [vmem:[%s1344_s7 + $0x78] sm:$0xff]   ;;  %p1065_p13 = pnand %p1064_p5, %p1458_p7  ;;  %p1070_p12 = scmp.lt.s32.totalorder %s1396_s8, %s1068_s9 }
  0x5f   : > { %878 = vmatprep.subr.bf16.mxu1 %v974_v9  ;;  %v990_v25 = vld [vmem:[%s1344_s7 + $0xf0] sm:$0xff]   ;;  %v994_v29 = vld [vmem:[%s1344_s7 + $0xf8] sm:$0xff]   ;;  %v644_v4 = vld [vmem:[%s271_s11] sm:$0x1] }
  0x60   : > { %v991_v26 = vld [vmem:[%s1344_s7 + $0x30] sm:$0xff]   ;;  %v995_v30 = vld [vmem:[%s1344_s7 + $0x38] sm:$0xff]   ;;  %v845_v9 = vld [vmem:[%s271_s11 + $0x1] ss:$0 sm:$0xff]  ;;  %p1066_p10 = pneg %p1065_p13 }
  0x61   : > { %857 = vmatpush3.bf16.msra.mxu0 %v975_v10  ;;  %v992_v27 = vld [vmem:[%s1344_s7 + $0xb0] sm:$0xff]   ;;  %v996_v31 = vld [vmem:[%s1344_s7 + $0xb8] sm:$0xff]   ;;  %s1069_s7 = scalar_lea.vmem %s1068_s9, 128 }
  0x62   : > { %879 = vmatpush3.bf16.msra.mxu1 %v976_v11  ;;  %858 = vmatprep.subr.bf16.mxu0 %v977_v12  ;;  %v273_v32 = vld [vmem:[%s1336_s18] sm:$0xff]  ;;  %v274_v33 = vld [vmem:[%s1336_s18 + $0x8] sm:$0xff]  ;;  %s661_s18 = scalar_lea.sflag [#allocation4], %s1332_s30  ;;  %p1071_p1 = scmp.lt.s32.totalorder %s1069_s7, %s1063_s28 }
  0x63   : > { %880 = vmatprep.subr.bf16.mxu1 %v978_v13  ;;  %v809_v34 = vcombine.low %v273_v32, %v273_v32  ;;  %v810_v35 = vcombine.high %v273_v32, %v273_v32  ;;  %v811_v36 = vcombine.low %v274_v33, %v274_v33  ;;  %v812_v37 = vcombine.high %v274_v33, %v274_v33 }
  0x64   : > { %p1072_p2 = por %p1071_p1, %p1070_p12 }
  0x65   : > { %859 = vmatpush3.bf16.msra.mxu0 %v979_v14  ;;  %577 = vmatprep.mubr.bf16.mxu0 %v810_v35 }
  0x66   : > { %881 = vmatpush3.bf16.msra.mxu1 %v980_v15  ;;  %860 = vmatprep.subr.bf16.mxu0 %v981_v16  ;;  %p1073_p9 = pnand %p1072_p2, %p1066_p10 }
  0x67   : > { %882 = vmatprep.subr.bf16.mxu1 %v982_v17  ;;  %617 = vmatprep.mubr.bf16.mxu1 %v812_v37 }
  0x69   : > { %861 = vmatpush3.bf16.msra.mxu0 %v983_v18 }
  0x6a   : > { %883 = vmatpush3.bf16.msra.mxu1 %v984_v19  ;;  %862 = vmatprep.subr.bf16.mxu0 %v985_v20 }
  0x6b   : > { %884 = vmatprep.subr.bf16.mxu1 %v986_v21 }
  0x6d   : > { %863 = vmatpush3.bf16.msra.mxu0 %v987_v22 }
  0x6e   : > { %885 = vmatpush3.bf16.msra.mxu1 %v988_v23  ;;  %864 = vmatprep.subr.bf16.mxu0 %v989_v24 }
  0x6f   : > { %886 = vmatprep.subr.bf16.mxu1 %v990_v25 }
  0x71   : > { %865 = vmatpush3.bf16.msra.mxu0 %v991_v26 }
  0x72   : > { %887 = vmatpush3.bf16.msra.mxu1 %v992_v27  ;;  %866 = vmatprep.subr.bf16.mxu0 %v993_v28 }
  0x73   : > { %888 = vmatprep.subr.bf16.mxu1 %v994_v29 }
  0x75   : > { %867 = vmatpush3.bf16.msra.mxu0 %v995_v30 }
  0x76   : > { %889 = vmatpush3.bf16.msra.mxu1 %v996_v31 }
  0x78   : > { %578 = vmatmul.mubr.bf16.vlgmr.msra.gmra.mrb[0].mxu0 %v809_v34 }
  0x79   : > { %618 = vmatmul.mubr.bf16.vlgmr.msra.gmra.mrb[0].mxu1 %v811_v36 }
 0x14b   : > { %v868_v38 = vpop.f32.mrb[0].mxu0 }
 0x14c   : > { %v890_v39 = vpop.f32.mrb[0].mxu1  ;;  %v869_v40 = vpop.f32.mrb[1].mxu0 }
 0x14d   : > { %v891_v41 = vpop.f32.mrb[1].mxu1  ;;  %v870_v42 = vadd.f32 %v869_v40, %v868_v38  ;;  %v871_v44 = vpop.f32.mrb[2].mxu0 }
 0x14e   : > { %v892_v43 = vadd.f32 %v891_v41, %v890_v39  ;;  %v893_v45 = vpop.f32.mrb[2].mxu1  ;;  %v872_v46 = vpop.f32.mrb[3].mxu0 }
 0x14f   : > { %v894_v47 = vpop.f32.mrb[3].mxu1 }
 0x150   : > { %v620_v48 = vadd.f32 %v892_v43, %v870_v42 }
 0x152   : > { %v625_v49 = vrot.slane %v620_v48, 4 }
 0x154   : > { %v626_v50 = vadd.f32 %v625_v49, %v620_v48 }
 0x156   : > { %v627_v51 = vrot.slane %v626_v50, 2 }
 0x158   : > { %v628_v52 = vadd.f32 %v627_v51, %v626_v50 }
 0x15a   : > { %v629_v53 = vrot.slane %v628_v52, 1 }
 0x15c   : > { %v630_v54 = vadd.f32 %v629_v53, %v628_v52 }
 0x15e   : > { %v632_v55 = vmul.f32 0.125, %v630_v54 }
 0x160   : > { %v633_v56 = vsub.f32 %v620_v48, %v632_v55 }
 0x162   : > { %v634_v57 = vmul.f32 %v633_v56, %v633_v56 }
 0x164   : > { %v635_v58 = vrot.slane %v634_v57, 4 }
 0x166   : > { %v636_v59 = vadd.f32 %v635_v58, %v634_v57 }
 0x168   : > { %v637_v60 = vrot.slane %v636_v59, 2 }
 0x16a   : > { %v638_v61 = vadd.f32 %v637_v60, %v636_v59 }
 0x16c   : > { %v639_v62 = vrot.slane %v638_v61, 1 }
 0x16e   : > { %v640_v63 = vadd.f32 %v639_v62, %v638_v61 }
 0x170   : > { %v641_v0 = vmul.f32 0.125, %v640_v63 }
 0x172   : > { %v642_v1 = vadd.f32 1e-05, %v641_v0 }
 0x174   : > { %1001 = vrsqrt.f32 %v642_v1 }
 0x17e   : > { %v1002_v6 = vpop.eup %1001 }
 0x17f   : > { %v645_v7 = vmul.f32 %v1002_v6, %v644_v4 }
 0x181   : > { %v650_v8 = vrot.slane %v645_v7, %v649_v5 }
 0x183   : > { %v651_v10 = vmul.f32 %v650_v8, %v633_v56 }
 0x185   : > { %v656_v11 = vadd.f32 %v845_v9, %v651_v10 }
 0x187   : > { %v657_v12 = vmax.f32 %v656_v11, 0.0 }
 0x189   : > { %v658_v13 = vpack.c.bf16 %v657_v12, %v657_v12 }
 0x18b   : > { %659 = vst [vmem:[%s264_s23] sm:$0xf] %v658_v13 }
 0x18c   : > { %1076 = shalt.err (!%p1073_p9)
}
 0x18d   : > { %s1077_s30 = scalar_lea.hbm %s1394_s5, 64  ;;  %s1081_s29 = scalar_lea.hbm %s1446_s3, 128 }
 0x18e   : > { %p1078_p11 = scmp.ne.s32.totalorder %s1394_s5, %s1077_s30  ;;  %p1082_p4 = scmp.lt.u32.totalorder %s1394_s5, %s1446_s3 }
 0x18f   : > { %p1083_p8 = scmp.lt.u32.totalorder %s1081_s29, %s1077_s30  ;;  %p1085_p5 = scmp.lt.u32.totalorder %s1077_s30, %s1394_s5 }
 0x190   : > { %p1079_p3 = pnand %p1078_p11, %p1458_p7 }
 0x191   : > { %p1084_p0 = por %p1083_p8, %p1082_p4 }
 0x192   : > { %p1080_p6 = pneg %p1079_p3 }
 0x193   : > { %p1086_p13 = por %p1085_p5, %p1084_p0 }
 0x195   : > { %p1087_p10 = pnand %p1086_p13, %p1080_p6 }
 0x197   : > { %1090 = shalt.err (!%p1087_p10)
}
 0x198   : > { %900 = dma.vmem_to_hbm [thread:$0]  (%p1458_p7), %s1396_s8, 64, %s1394_s5, %s661_s18  }
 0x199 PF: > { %s687_s19 = sand.u32 1, %s1129_s12   ;;  %p1459_p12 = scmp.ne.s32.totalorder %s1452_s27, 0 }
 0x19a   : > { %p1460_p1 = scmp.ge.s32.totalorder %s1149_s17, 2  ;;  %s688_s21 = scalar_lea.sflag [#allocation4], %s687_s19 }
 0x19c   : > { %p910_p2 = pnand %p1460_p1, %p1459_p12 }
 0x19e   : > { %1124 = dma.done.wait (!%p910_p2), %s688_s21, 64  }
 0x19f   : > { %1126 = vsyncadd (!%p910_p2), %s688_s21, 4294967232  ;;  %s22_s17 = sadd.s32 1, %s1149_s17   ;;  %s1461_s12 = smov %s1133_s13 }
 0x1a0   : > { %p19_p9 = scmp.ge.s32.totalorder %s22_s17, 4   ;;  %s1462_s13 = smov %s1137_s14 }
 0x1a1   : > { %s1463_s14 = smov %s1232_s26  ;;  %s1464_s15 = smov %s1145_s16 }
 0x1a2   : > { %s1465_s16 = smov %s1467_s20  ;;  %21 = sbr.rel (!%p19_p9) target bundleno = 8 (0x8), region = 93 }
 0x1a9   :  { %693 = vsyncpa [#allocation3], 1 }
 0x1aa   :  { %695 = vsyncpa [#allocation3 + $0x1], 1 }
 0x1ab   :  { %696 = vsyncpa [#allocation6], 1 }
 0x1ac   :  { %698 = vsyncpa [#allocation6 + $0x1], 1 }
 0x1ad   :  { %699 = vsyncpa [#allocation4], 1 }
 0x1ae   :  { %701 = vsyncpa [#allocation4 + $0x1], 1 }

</bundles_post_ra>
